<compile_context>
chip_gen: v7x
topology: tpu7x:2x2x1
jax: 0.10.0
libtpu: 0.0.40
codegen_flags: <defaults>
</compile_context>

<pallas_src>
import functools

import jax
import jax.numpy as jnp
from jax import lax
from jax.experimental import pallas as pl
from jax.experimental.pallas import tpu as pltpu


def _round_up(x, m):
    return -(-x // m) * m


def _gather_kernel(idx_ref, table_ref, out_ref, row_buf, sem):
    """One grid step: DMA-gather `block_n` rows of the embedding table.

    idx_ref   : (n_pad,)          int32  SMEM   (scalar-prefetched, full vector)
    table_ref : (V, D)            f32    HBM    (memory_space=pl.ANY, never resident)
    out_ref   : (block_n, D)      f32    VMEM   (pipelined output tile)
    row_buf   : (block_n, D)      f32    VMEM scratch (DMA landing buffer)
    sem       : scalar DMA semaphore shared by all row copies of this step
    """
    block_n = out_ref.shape[0]
    base = pl.program_id(0) * block_n

    # Issue one row DMA per output row of this tile (all on one semaphore).
    def issue(r, carry):
        row = idx_ref[base + r]
        pltpu.make_async_copy(table_ref.at[row], row_buf.at[r], sem).start()
        return carry

    lax.fori_loop(0, block_n, issue, 0)

    # Wait for all of them: each wait accounts for one row's bytes, so after
    # block_n waits every issued copy has completed.
    def drain(r, carry):
        pltpu.make_async_copy(table_ref.at[0], row_buf.at[r], sem).wait()
        return carry

    lax.fori_loop(0, block_n, drain, 0)

    out_ref[...] = row_buf[...]


@functools.partial(jax.jit, static_argnames=("block_n",))
def normal_embedding_forward(x, emb_table, *, block_n=256):
    """Equivalent of NormalEmbedding.forward: returns emb_table[x].

    x         : int array of any shape (token ids)
    emb_table : (vocab_size, emb_dim) float table
    returns   : array of shape x.shape + (emb_dim,), dtype of emb_table
    """
    vocab_size, emb_dim = emb_table.shape
    orig_shape = x.shape

    # Flatten + clamp (torch raises on OOB; we clamp like jnp.take on TPU).
    idx = jnp.clip(x.reshape(-1).astype(jnp.int32), 0, vocab_size - 1)
    n = idx.shape[0]

    # Tile: at most block_n rows per step, at least one 8-row sublane tile;
    # for tiny N this collapses to a single grid step.
    bn = min(block_n, _round_up(n, 8))
    n_pad = _round_up(n, bn)
    idx = jnp.pad(idx, (0, n_pad - n))  # padded slots gather row 0, sliced off below

    grid = (n_pad // bn,)
    out = pl.pallas_call(
        _gather_kernel,
        out_shape=jax.ShapeDtypeStruct((n_pad, emb_dim), emb_table.dtype),
        grid_spec=pltpu.PrefetchScalarGridSpec(
            num_scalar_prefetch=1,                      # idx -> SMEM
            grid=grid,
            in_specs=[
                pl.BlockSpec(memory_space=pl.ANY),      # table stays in HBM
            ],
            out_specs=pl.BlockSpec((bn, emb_dim), lambda i, idx: (i, 0)),
            scratch_shapes=[
                pltpu.VMEM((bn, emb_dim), emb_table.dtype),
                pltpu.SemaphoreType.DMA,
            ],
        ),
        compiler_params=pltpu.CompilerParams(
            dimension_semantics=("parallel",),          # megacore-shardable on v7x
        ),
    )(idx, emb_table)

    out = out[:n]
    return out.reshape(orig_shape + (emb_dim,))


def make_embedding_table(vocab_size, emb_dim, key):
    """Deterministic stand-in for nn.Embedding's N(0,1)-initialized weight."""
    return jax.random.normal(key, (vocab_size, emb_dim), dtype=jnp.float32)


if __name__ == "__main__":
    vocab_size = 64
    emb_dim = 256          # matches the module default
    batch, seq = 2, 8

    key = jax.random.PRNGKey(0)
    k_tab, k_idx = jax.random.split(key)

    emb_table = make_embedding_table(vocab_size, emb_dim, k_tab)
    x = jax.random.randint(k_idx, (batch, seq), 0, vocab_size, dtype=jnp.int32)

    out = normal_embedding_forward(x, emb_table)
    out = jax.block_until_ready(out)

    # Reference semantics of nn.Embedding forward.
    ref = jnp.take(emb_table, x, axis=0)
    assert out.shape == (batch, seq, emb_dim), out.shape
    assert jnp.allclose(out, ref, atol=1e-6), "mismatch vs reference gather"

    print("KERNEL_OK")
</pallas_src>

<mosaic_0001>
module attributes {stable_mosaic.version = 11 : i64} {
  func.func @_gather_kernel(%arg0: i32, %arg1: memref<16xi32, #tpu.memory_space<smem>>, %arg2: memref<64x256xf32, #tpu.memory_space<any>>, %arg3: memref<16x256xf32, #tpu.memory_space<vmem>>, %arg4: memref<16x256xf32, #tpu.memory_space<vmem>>, %arg5: memref<!tpu.dma_semaphore, #tpu.memory_space<semaphore_mem>>) attributes {dimension_semantics = [#tpu.dimension_semantics<parallel>], iteration_bounds = array<i64: 1>, scalar_prefetch = 1 : i64, scratch_operands = 2 : i64, tpu.core_type = #tpu.core_type<tc>, window_params = [{}, {transform_indices = @transform_1, window_bounds = array<i64: 16, 256>}]} {
    %c16_i32 = arith.constant 16 : i32
    %0 = arith.muli %arg0, %c16_i32 : i32
    %c0_i32 = arith.constant 0 : i32
    %c16_i32_0 = arith.constant 16 : i32
    %1 = arith.addi %c0_i32, %c16_i32_0 : i32
    %c1_i32 = arith.constant 1 : i32
    scf.for %arg6 = %c0_i32 to %1 step %c1_i32  : i32 {
      %5 = arith.addi %0, %arg6 : i32
      %6 = arith.index_cast %5 : i32 to index
      %7 = memref.load %arg1[%6] : memref<16xi32, #tpu.memory_space<smem>>
      %c0_i32_9 = arith.constant 0 : i32
      %8 = tpu.memref_slice %arg2[%7, %c0_i32_9] : memref<64x256xf32, #tpu.memory_space<any>> -> memref<1x256xf32, #tpu.memory_space<any>>
      %9 = tpu.memref_squeeze %8 : memref<1x256xf32, #tpu.memory_space<any>> -> memref<256xf32, #tpu.memory_space<any>>
      %c0_i32_10 = arith.constant 0 : i32
      %10 = tpu.memref_slice %arg4[%arg6, %c0_i32_10] : memref<16x256xf32, #tpu.memory_space<vmem>> -> memref<1x256xf32, #tpu.memory_space<vmem>>
      %11 = tpu.memref_squeeze %10 : memref<1x256xf32, #tpu.memory_space<vmem>> -> memref<256xf32, #tpu.memory_space<vmem>>
      tpu.enqueue_dma source(%9 : memref<256xf32, #tpu.memory_space<any>>) target(%11 : memref<256xf32, #tpu.memory_space<vmem>>) target_semaphore(%arg5 : memref<!tpu.dma_semaphore, #tpu.memory_space<semaphore_mem>>)
    }
    %c16_i32_1 = arith.constant 16 : i32
    %c0_i32_2 = arith.constant 0 : i32
    %c16_i32_3 = arith.constant 16 : i32
    %2 = arith.addi %c0_i32_2, %c16_i32_3 : i32
    %c1_i32_4 = arith.constant 1 : i32
    scf.for %arg6 = %c0_i32_2 to %2 step %c1_i32_4  : i32 {
      %c0_i32_9 = arith.constant 0 : i32
      %c0_i32_10 = arith.constant 0 : i32
      %5 = tpu.memref_slice %arg2[%c0_i32_9, %c0_i32_10] : memref<64x256xf32, #tpu.memory_space<any>> -> memref<1x256xf32, #tpu.memory_space<any>>
      %6 = tpu.memref_squeeze %5 : memref<1x256xf32, #tpu.memory_space<any>> -> memref<256xf32, #tpu.memory_space<any>>
      %c0_i32_11 = arith.constant 0 : i32
      %7 = tpu.memref_slice %arg4[%arg6, %c0_i32_11] : memref<16x256xf32, #tpu.memory_space<vmem>> -> memref<1x256xf32, #tpu.memory_space<vmem>>
      %8 = tpu.memref_squeeze %7 : memref<1x256xf32, #tpu.memory_space<vmem>> -> memref<256xf32, #tpu.memory_space<vmem>>
      tpu.wait_dma2 semaphore(%arg5 : memref<!tpu.dma_semaphore, #tpu.memory_space<semaphore_mem>>) src(%6 : memref<256xf32, #tpu.memory_space<any>>) dst(%8 : memref<256xf32, #tpu.memory_space<vmem>>)
    }
    %c16_i32_5 = arith.constant 16 : i32
    %c0 = arith.constant 0 : index
    %c0_6 = arith.constant 0 : index
    %3 = vector.load %arg4[%c0, %c0_6] : memref<16x256xf32, #tpu.memory_space<vmem>>, vector<16x256xf32>
    %c0_7 = arith.constant 0 : index
    %c0_8 = arith.constant 0 : index
    %4 = vector.load %arg3[%c0_7, %c0_8] : memref<16x256xf32, #tpu.memory_space<vmem>>, vector<16x256xf32>
    tpu.vector_store %arg3[%c0_7, %c0_8], %3 {strides = array<i32>} : memref<16x256xf32, #tpu.memory_space<vmem>>, vector<16x256xf32>,
    return
  }
  func.func @transform_1(%arg0: i32, %arg1: memref<16xi32, #tpu.memory_space<smem>>) -> (i32, i32) {
    %c0_i32 = arith.constant 0 : i32
    %c0_i32_0 = arith.constant 0 : i32
    return %arg0, %c0_i32 : i32, i32
  }
}

</mosaic_0001>

<bundles_post_ra>
// kernel: normal_embedding_forward.1
= control target key start
LH: loop header
LB: loop body
LE: loop exit
PB: predicated region body
PF: predicated region fallthrough
CT: control target
= control target key end

     0   :  { %s263_s0 = inlined_call_operand.vmem [shape: s32[16], index: 0, kind: input, shape index: {}]   ;;  %s264_s1 = inlined_call_operand.hbm [shape: f32[64,256], index: 1, kind: input, shape index: {}]   ;;  %s265_s2 = inlined_call_operand.hbm [shape: f32[16,256], index: 2, kind: output, shape index: {}]  }
   0x1   :  { %s7_s11 = sshll.u32 %s263_s0, 4  ;;  %s8_s11 = int_to_ptr.vmem [resolvable:$true] %s7_s11 }
   0x2   :  { %s120_s12 = scalar_lea.vmem %s8_s11, 16  ;;  %p125_p1 = scmp.lt.s32.totalorder %s8_s11, %s8_s11 }
   0x3   :  { %p121_p0 = scmp.ne.s32.totalorder %s8_s11, %s120_s12  ;;  %p126_p2 = scmp.lt.s32.totalorder %s120_s12, %s120_s12 }
   0x5   :  { %p127_p3 = por %p126_p2, %p125_p1 }
   0x7   :  { %p128_p4 = pnand %p127_p3, %p121_p0 }
   0x9   :  { %131 = shalt.err (!%p128_p4)  }
   0xa   :  { %s200_s13 = smov [#allocation5]  }
   0xb   :  { %10 = dma.vmem_to_smem %s8_s11, 16, %s200_s13, [#allocation4] }
   0xc   :  { %186 = dma.done.wait [#allocation4], 16 }
   0xd   :  { %187 = vsyncadd [#allocation4], 4294967280 }
   0xe   :  { %12 = sfence }
   0xf   :  { %13 = vsyncpa [#allocation7], 0  ;;  %s225_s14 = smov 0  }
  0x10 LB: > { %s22_s0 = sld [smem:[#allocation5 + %s194_s14]]  ;;  %s29_s15 = sshrl.u32 %s194_s14, 3  ;;  %s194_s14 = sphi %s225_s14, %s20_s14  }
  0x11   : > { %s30_s16 = sand.u32 7, %s194_s14   ;;  %s96_s17 = sshll.u32 %s29_s15, 4 }
  0x12   : > { %s32_s18 = sadd.s32 %s96_s17, %s30_s16  ;;  %s134_s4 = scalar_lea.hbm %s264_s1, 2048 }
  0x13   : > { %s33_s19 = scalar_lea.vmem [#allocation2], %s32_s18 }
  0x14   : > { %s35_s20 = sshll.u32 %s33_s19, 4  ;;  %s233_s20 = int_to_ptr.vmem [resolvable:$true] %s35_s20 }
  0x16   : > { %s23_s21 = sshrl.u32 %s22_s0, 3  ;;  %s24_s22 = sand.u32 7, %s22_s0  }
  0x17   : > { %s94_s23 = sshll.u32 %s23_s21, 4 }
  0x18   : > { %s26_s24 = sadd.s32 %s94_s23, %s24_s22 }
  0x19   : > { %s95_s25 = sshll.u32 %s26_s24, 4 }
  0x1a   : > { %s28_s28 = scalar_lea.hbm %s264_s1, %s95_s25 }
  0x1b   : > { %s132_s29 = scalar_lea.hbm %s28_s28, 32  ;;  %p135_p6 = scmp.lt.u32.totalorder %s28_s28, %s264_s1 }
  0x1c   : > { %p133_p5 = scmp.ne.s32.totalorder %s28_s28, %s132_s29  ;;  %p136_p7 = scmp.lt.u32.totalorder %s134_s4, %s132_s29 }
  0x1d   : > { %p138_p9 = scmp.lt.u32.totalorder %s132_s29, %s28_s28 }
  0x1e   : > { %p137_p8 = por %p136_p7, %p135_p6 }
  0x20   : > { %p139_p10 = por %p138_p9, %p137_p8 }
  0x22   : > { %p140_p11 = pnand %p139_p10, %p133_p5 }
  0x24   : > { %143 = shalt.err (!%p140_p11)  }
  0x25   : > { %s144_s7 = scalar_lea.vmem %s233_s20, 32  ;;  %s201_s8 = smov [#allocation2]  }
  0x26   : > { %p145_p12 = scmp.ne.s32.totalorder %s233_s20, %s144_s7  ;;  %s146_s9 = sshll.u32 %s201_s8, 4  ;;  %s147_s9 = int_to_ptr.vmem [resolvable:$false] %s146_s9 }
  0x27   : > { %s148_s10 = scalar_lea.vmem %s147_s9, 512  ;;  %p149_p13 = scmp.lt.s32.totalorder %s233_s20, %s147_s9 }
  0x28   : > { %p150_p0 = scmp.lt.s32.totalorder %s148_s10, %s144_s7 }
  0x2a   : > { %p151_p1 = por %p150_p0, %p149_p13 }
  0x2c   : > { %p152_p2 = pnand %p151_p1, %p145_p12 }
  0x2e   : > { %155 = shalt.err (!%p152_p2)  }
  0x2f   : > { %s202_s11 = smov 128   ;;  %s203_s12 = smov 1  }
  0x30   : > { %38 = dma.hbm_to_vmem [thread:$0]  %s28_s28, 32, %s233_s20, [#allocation3], %s202_s11, %s202_s11, %s203_s12 }
  0x31   : > { %s20_s14 = sadd.s32 1, %s194_s14  }
  0x32   : > { %p17_p3 = scmp.ge.s32.totalorder %s20_s14, 16  }
  0x33   :  { %s196_s13 = smov (%p17_p3), 0  }
  0x34   :  { %19 = sbr.rel (!%p17_p3) target bundleno = 16 (0x10), region = 36 }
  0x3b LB: > { %188 = dma.done.wait [#allocation3], 32  ;;  %s198_s13 = sphi %s196_s13, %s44_s13  }
  0x3c   : > { %189 = vsyncadd [#allocation3], 4294967264  ;;  %s44_s13 = sadd.s32 1, %s198_s13  }
  0x3d   : > { %p41_p4 = scmp.ge.s32.totalorder %s44_s13, 16  }
  0x3e   :  { %v47_v0 = vld [vmem:[#allocation2] sm:$0xff] (%p41_p4)  ;;  %v48_v1 = vld [vmem:[#allocation2 + $0x8] sm:$0xff] (%p41_p4)  ;;  %v49_v2 = vld [vmem:[#allocation2 + $0x10] sm:$0xff] (%p41_p4)  ;;  %s204_s0 = smov (%p41_p4), [#allocation6]  }
  0x3f   :  { %43 = sbr.rel (!%p41_p4) target bundleno = 59 (0x3b), region = 47  ;;  %51 = vst [vmem:[#allocation6] sm:$0xff] (%p41_p4), %v47_v0  ;;  %52 = vst [vmem:[#allocation6 + $0x8] sm:$0xff] (%p41_p4), %v48_v1  ;;  %v50_v3 = vld [vmem:[#allocation2 + $0x18] sm:$0xff] (%p41_p4)  ;;  %s60_s14 = sshll.u32 (%p41_p4), %s204_s0, 4  ;;  %s61_s14 = int_to_ptr.vmem [resolvable:$true] %s60_s14 }
  0x40   :  { %53 = vst [vmem:[#allocation6 + $0x10] sm:$0xff] (%p41_p4), %v49_v2  ;;  %54 = vst [vmem:[#allocation6 + $0x18] sm:$0xff] (%p41_p4), %v50_v3  ;;  %s156_s1 = scalar_lea.vmem (%p41_p4), %s61_s14, 512  ;;  %p161_p6 = scmp.lt.s32.totalorder (%p41_p4), %s61_s14, %s61_s14 }
  0x41   :  { %p157_p5 = scmp.ne.s32.totalorder (%p41_p4), %s61_s14, %s156_s1  ;;  %p162_p7 = scmp.lt.s32.totalorder (%p41_p4), %s156_s1, %s156_s1 }
  0x43   :  { %p163_p8 = por (%p41_p4), %p162_p7, %p161_p6 }
  0x45   :  { %p164_p9 = pnand (%p41_p4), %p163_p8, %p157_p5 }
  0x47   :  { %167 = shalt.err (!%p164_p9)
}
  0x48   :  { %s168_s17 = scalar_lea.hbm %s265_s2, 512 }
  0x49   :  { %p169_p10 = scmp.ne.s32.totalorder %s265_s2, %s168_s17  ;;  %p172_p11 = scmp.lt.u32.totalorder %s168_s17, %s265_s2 }
  0x4b   :  { %p174_p12 = pnand %p172_p11, %p169_p10 }
  0x4d   :  { %177 = shalt.err (!%p174_p12)
}
  0x4e   :  { %s205_s22 = smov 256   ;;  %s206_s23 = smov 16  }
  0x4f   :  { %66 = dma.vmem_to_hbm [thread:$0]  %s61_s14, 512, %s265_s2, [#allocation7], %s205_s22, %s205_s22, %s206_s23  }
  0x50   :  { %190 = dma.done.wait [#allocation7], 512  }
  0x51   :  { %191 = vsyncadd [#allocation7], 4294966784 }
  0x52   :  { %70 = vsyncpa [#allocation7], 1 }
  0x53   :  { %71 = vsyncmov [#allocation3] }
  0x56   :  { %s72_s26 = vpop.sfrf %71 }
  0x57   :  { %p97_p13 = scmp.ne.s32.totalorder %s72_s26, 0 }
  0x59   :  { %76 = shalt.err (%p97_p13)  }

</bundles_post_ra>
